<compile_context>
chip_gen: v6e
topology: v6e:2x2x1
jax: 0.10.0
libtpu: 0.0.40
codegen_flags: <defaults>
</compile_context>

<pallas_src>
import functools

import jax
import jax.numpy as jnp
from jax import lax
from jax.experimental import pallas as pl
from jax.experimental.pallas import tpu as pltpu


def _phase_taps_1d(K, S, lo):
    """For each output phase p in [0, S): list of (flipped tap index kf, input offset d)."""
    out = []
    for p in range(S):
        r = (lo - p) % S
        e = (p + r - lo) // S
        taps = []
        t = 0
        kf = r
        while kf < K:
            taps.append((kf, t + e))
            t += 1
            kf += S
        out.append(taps)
    return out


def _convt_kernel(x_ref, w_ref, b_ref, o_ref, acc_ref, *, plan, npos):
    # x_ref  : (Cin, Hpad*Wpad)      one (group, batch) image, flat row-major spatial
    # w_ref  : (K*K, Cout, Cin)      per-group tap matrices, in `plan` order
    # b_ref  : (Cout, 1)
    # o_ref  : (S*S, Cout, Hb*Wpad)  per-phase lane-dense output slabs
    # acc_ref: VMEM (Cout, Hb*Wpad)  f32 accumulator
    b = b_ref[...].astype(jnp.float32)
    for phase_idx, taps in plan:
        if not taps:  # phase with no contributing taps: bias only
            o_ref[phase_idx] = jnp.broadcast_to(b, (b.shape[0], npos)).astype(o_ref.dtype)
            continue
        d0, w0 = taps[0]
        acc_ref[...] = jnp.dot(w_ref[w0], x_ref[:, d0:d0 + npos],
                               preferred_element_type=jnp.float32)
        for d, wi in taps[1:]:
            acc_ref[...] += jnp.dot(w_ref[wi], x_ref[:, d:d + npos],
                                    preferred_element_type=jnp.float32)
        o_ref[phase_idx] = (acc_ref[...] + b).astype(o_ref.dtype)


@functools.partial(jax.jit,
                   static_argnames=("kernel_size", "stride", "padding", "output_padding"))
def group_conv_transpose(x, weight, bias, *, kernel_size, stride, padding, output_padding):
    """x: (N, Cin, H, 3W); weight: (3*Cin, Cout, K, K) [PyTorch ConvTranspose2d layout];
    bias: (3*Cout,). Returns (N, Cout, Hout, 3*Wout)."""
    N, Cin, H, W3 = x.shape
    assert W3 % 3 == 0
    W = W3 // 3
    K, S, P, OP = kernel_size, stride, padding, output_padding
    Cout = weight.shape[1]
    lo = K - 1 - P
    assert lo >= 0, "gather form needs K-1-P >= 0"
    Hout = (H - 1) * S - 2 * P + K + OP
    Wout = (W - 1) * S - 2 * P + K + OP
    Hb = -(-Hout // S)   # output rows per phase (rounded up; extra rows sliced off later)
    Wb = -(-Wout // S)

    row_taps = _phase_taps_1d(K, S, lo)
    col_taps = _phase_taps_1d(K, S, lo)

    all_dh = [d for taps in row_taps for (_, d) in taps]
    all_dw = [d for taps in col_taps for (_, d) in taps]
    pad_lo_h = max(0, -min(all_dh)); max_dh = max(all_dh)
    pad_lo_w = max(0, -min(all_dw)); max_dw = max(all_dw)
    pad_hi_h = max(0, Hb - 1 + max_dh - (H - 1)) + 1   # +1 row: flat lane-slices stay in-bounds
    pad_hi_w = max(0, Wb - 1 + max_dw - (W - 1))
    Hpad, Wpad = H + pad_lo_h + pad_hi_h, W + pad_lo_w + pad_hi_w
    L = Hpad * Wpad
    Npos = Hb * Wpad

    # --- static per-phase plan + packed per-tap weight matrices (gather-form: flipped) ---
    wg = weight.reshape(3, Cin, Cout, K, K)
    mats, plan = [], []
    idx = 0
    for p in range(S):
        for q in range(S):
            taps = []
            for (kfi, dh) in row_taps[p]:
                for (kfj, dw) in col_taps[q]:
                    mats.append(jnp.transpose(wg[:, :, :, K - 1 - kfi, K - 1 - kfj],
                                              (0, 2, 1)))              # (3, Cout, Cin)
                    taps.append(((dh + pad_lo_h) * Wpad + (dw + pad_lo_w), idx))
                    idx += 1
            plan.append((p * S + q, tuple(taps)))
    w_pack = jnp.stack(mats, axis=1)                                    # (3, K*K, Cout, Cin)
    b_pack = bias.reshape(3, Cout, 1)

    # --- input: width-chunk into groups, pad small halo, flatten spatial (no dilation!) ---
    xg = jnp.transpose(x.reshape(N, Cin, H, 3, W), (3, 0, 1, 2, 4))     # (3, N, Cin, H, W)
    xp = jnp.pad(xg, ((0, 0), (0, 0), (0, 0),
                      (pad_lo_h, pad_hi_h), (pad_lo_w, pad_hi_w)))
    x_pack = xp.reshape(3, N, Cin, L)

    out_pal = pl.pallas_call(
        functools.partial(_convt_kernel, plan=tuple(plan), npos=Npos),
        out_shape=jax.ShapeDtypeStruct((3, N, S * S, Cout, Npos), x.dtype),
        grid=(3, N),
        in_specs=[
            pl.BlockSpec((None, None, Cin, L), lambda g, n: (g, n, 0, 0)),
            pl.BlockSpec((None, K * K, Cout, Cin), lambda g, n: (g, 0, 0, 0)),
            pl.BlockSpec((None, Cout, 1), lambda g, n: (g, 0, 0)),
        ],
        out_specs=pl.BlockSpec((None, None, S * S, Cout, Npos),
                               lambda g, n: (g, n, 0, 0, 0)),
        scratch_shapes=[pltpu.VMEM((Cout, Npos), jnp.float32)],
        compiler_params=pltpu.CompilerParams(
            dimension_semantics=("parallel", "parallel")),
    )(x_pack, w_pack, b_pack)

    # (3, N, S*S, Cout, Hb*Wpad) -> (N, Cout, Hout, 3*Wout): de-interleave phases, drop halo.
    out = out_pal.reshape(3, N, S, S, Cout, Hb, Wpad)[..., :Wb]
    out = jnp.transpose(out, (1, 4, 5, 2, 0, 6, 3))         # (N, Cout, Hb, p, 3, Wb, q)
    out = out.reshape(N, Cout, Hb * S, 3, Wb * S)[:, :, :Hout, :, :Wout]
    return out.reshape(N, Cout, Hout, 3 * Wout)


def _reference_forward(x, weight, bias, *, kernel_size, stride, padding, output_padding):
    """Pure-XLA reference (transposed conv via lhs_dilation), full f32 precision."""
    N, Cin, H, W3 = x.shape
    K, S, P, OP = kernel_size, stride, padding, output_padding
    Cout = weight.shape[1]
    xg = jnp.concatenate(jnp.split(x, 3, axis=-1), axis=1)              # (N, 3*Cin, H, W)
    wg = weight.reshape(3, Cin, Cout, K, K)[:, :, :, ::-1, ::-1]
    w_conv = jnp.transpose(wg, (0, 2, 1, 3, 4)).reshape(3 * Cout, Cin, K, K)
    out = lax.conv_general_dilated(
        xg, w_conv, window_strides=(1, 1),
        padding=[(K - 1 - P, K - 1 - P + OP), (K - 1 - P, K - 1 - P + OP)],
        lhs_dilation=(S, S), rhs_dilation=(1, 1),
        dimension_numbers=("NCHW", "OIHW", "NCHW"),
        feature_group_count=3,
        precision=lax.Precision.HIGHEST)
    out = out + bias[None, :, None, None]
    return jnp.concatenate(jnp.split(out, 3, axis=1), axis=-1)


if __name__ == "__main__":
    def _run_case(key, N, Cin, Cout, H, W, K, S, P, OP):
        k1, k2, k3 = jax.random.split(key, 3)
        x = jax.random.normal(k1, (N, Cin, H, 3 * W), jnp.float32)
        # PyTorch ConvTranspose2d(3*Cin, 3*Cout, K, groups=3) weight: (3*Cin, Cout, K, K)
        weight = 0.1 * jax.random.normal(k2, (3 * Cin, Cout, K, K), jnp.float32)
        bias = 0.1 * jax.random.normal(k3, (3 * Cout,), jnp.float32)

        out = group_conv_transpose(x, weight, bias, kernel_size=K, stride=S,
                                   padding=P, output_padding=OP)
        out = jax.block_until_ready(out)

        Hout = (H - 1) * S - 2 * P + K + OP
        Wout = (W - 1) * S - 2 * P + K + OP
        assert out.shape == (N, Cout, Hout, 3 * Wout), out.shape

        ref = _reference_forward(x, weight, bias, kernel_size=K, stride=S,
                                 padding=P, output_padding=OP)
        err = float(jnp.max(jnp.abs(out - ref)))
        assert jnp.allclose(out, ref, atol=1e-5, rtol=1e-5), err

    key = jax.random.PRNGKey(0)
    k1, k2 = jax.random.split(key)
    # ConvTranspose2d(kernel=3, stride=2, pad=1, out_pad=1) on (2, 4, 8, 24)
    _run_case(k1, N=2, Cin=4, Cout=4, H=8, W=8, K=3, S=2, P=1, OP=1)
    # ConvTranspose2d(kernel=4, stride=2, pad=1, out_pad=0) on (2, 4, 8, 24)
    _run_case(k2, N=2, Cin=4, Cout=8, H=8, W=8, K=4, S=2, P=1, OP=0)

    print("KERNEL_OK")
</pallas_src>

<mosaic_0001>
module attributes {stable_mosaic.version = 11 : i64} {
  func.func @_convt_kernel(%arg0: i32, %arg1: i32, %arg2: memref<1x1x4x90xf32, #tpu.memory_space<vmem>>, %arg3: memref<1x9x4x4xf32, #tpu.memory_space<vmem>>, %arg4: memref<1x4x1xf32, #tpu.memory_space<vmem>>, %arg5: memref<1x1x4x4x72xf32, #tpu.memory_space<vmem>>, %arg6: memref<4x72xf32, #tpu.memory_space<vmem>>) attributes {dimension_semantics = [#tpu.dimension_semantics<parallel>, #tpu.dimension_semantics<parallel>], iteration_bounds = array<i64: 3, 2>, scalar_prefetch = 0 : i64, scratch_operands = 1 : i64, tpu.core_type = #tpu.core_type<tc>, window_params = [{transform_indices = @transform_0, window_bounds = array<i64: 1, 1, 4, 90>}, {transform_indices = @transform_1, window_bounds = array<i64: 1, 9, 4, 4>}, {transform_indices = @transform_2, window_bounds = array<i64: 1, 4, 1>}, {transform_indices = @transform_3, window_bounds = array<i64: 1, 1, 4, 4, 72>}]} {
    %c0 = arith.constant 0 : index
    %c0_0 = arith.constant 0 : index
    %c0_1 = arith.constant 0 : index
    %0 = vector.load %arg4[%c0, %c0_0, %c0_1] : memref<1x4x1xf32, #tpu.memory_space<vmem>>, vector<1x4x1xf32>
    %1 = vector.shape_cast %0 : vector<1x4x1xf32> to vector<4x1xf32>
    %c0_2 = arith.constant 0 : index
    %c0_3 = arith.constant 0 : index
    %c0_4 = arith.constant 0 : index
    %c0_5 = arith.constant 0 : index
    %2 = vector.load %arg3[%c0_2, %c0_3, %c0_4, %c0_5] : memref<1x9x4x4xf32, #tpu.memory_space<vmem>>, vector<1x1x4x4xf32>
    %3 = vector.shape_cast %2 : vector<1x1x4x4xf32> to vector<4x4xf32>
    %c0_6 = arith.constant 0 : index
    %c0_7 = arith.constant 0 : index
    %c0_8 = arith.constant 0 : index
    %c0_9 = arith.constant 0 : index
    %4 = vector.load %arg2[%c0_6, %c0_7, %c0_8, %c0_9] : memref<1x1x4x90xf32, #tpu.memory_space<vmem>>, vector<1x1x4x72xf32>
    %5 = vector.shape_cast %4 : vector<1x1x4x72xf32> to vector<4x72xf32>
    %cst = arith.constant dense<0.000000e+00> : vector<4x72xf32>
    %6 = tpu.matmul %3, %5, %cst {dimension_numbers = #tpu.dot_dimension_numbers<[1], [0], [0], [1], [0, 0, 1, 1], [], []>} : vector<4x4xf32>, vector<4x72xf32>, vector<4x72xf32> -> vector<4x72xf32>
    %c0_10 = arith.constant 0 : index
    %c0_11 = arith.constant 0 : index
    %7 = vector.load %arg6[%c0_10, %c0_11] : memref<4x72xf32, #tpu.memory_space<vmem>>, vector<4x72xf32>
    tpu.vector_store %arg6[%c0_10, %c0_11], %6 {strides = array<i32>} : memref<4x72xf32, #tpu.memory_space<vmem>>, vector<4x72xf32>,
    %c0_12 = arith.constant 0 : index
    %c0_13 = arith.constant 0 : index
    %8 = vector.load %arg6[%c0_12, %c0_13] : memref<4x72xf32, #tpu.memory_space<vmem>>, vector<4x72xf32>
    %9 = vector.broadcast %1 : vector<4x1xf32> to vector<4x72xf32>
    %10 = arith.addf %8, %9 : vector<4x72xf32>
    %c0_14 = arith.constant 0 : index
    %c0_15 = arith.constant 0 : index
    %c0_16 = arith.constant 0 : index
    %c0_17 = arith.constant 0 : index
    %c0_18 = arith.constant 0 : index
    %11 = vector.load %arg5[%c0_14, %c0_15, %c0_16, %c0_17, %c0_18] : memref<1x1x4x4x72xf32, #tpu.memory_space<vmem>>, vector<1x1x1x4x72xf32>
    %12 = vector.shape_cast %11 : vector<1x1x1x4x72xf32> to vector<4x72xf32>
    %13 = vector.shape_cast %10 : vector<4x72xf32> to vector<1x1x1x4x72xf32>
    tpu.vector_store %arg5[%c0_14, %c0_15, %c0_16, %c0_17, %c0_18], %13 {strides = array<i32>} : memref<1x1x4x4x72xf32, #tpu.memory_space<vmem>>, vector<1x1x1x4x72xf32>,
    %c0_19 = arith.constant 0 : index
    %c1 = arith.constant 1 : index
    %c0_20 = arith.constant 0 : index
    %c0_21 = arith.constant 0 : index
    %14 = vector.load %arg3[%c0_19, %c1, %c0_20, %c0_21] : memref<1x9x4x4xf32, #tpu.memory_space<vmem>>, vector<1x1x4x4xf32>
    %15 = vector.shape_cast %14 : vector<1x1x4x4xf32> to vector<4x4xf32>
    %c0_22 = arith.constant 0 : index
    %c0_23 = arith.constant 0 : index
    %c0_24 = arith.constant 0 : index
    %c0_25 = arith.constant 0 : index
    %16 = vector.load %arg2[%c0_22, %c0_23, %c0_24, %c0_25] : memref<1x1x4x90xf32, #tpu.memory_space<vmem>>, vector<1x1x4x72xf32>
    %17 = vector.shape_cast %16 : vector<1x1x4x72xf32> to vector<4x72xf32>
    %cst_26 = arith.constant dense<0.000000e+00> : vector<4x72xf32>
    %18 = tpu.matmul %15, %17, %cst_26 {dimension_numbers = #tpu.dot_dimension_numbers<[1], [0], [0], [1], [0, 0, 1, 1], [], []>} : vector<4x4xf32>, vector<4x72xf32>, vector<4x72xf32> -> vector<4x72xf32>
    %c0_27 = arith.constant 0 : index
    %c0_28 = arith.constant 0 : index
    %19 = vector.load %arg6[%c0_27, %c0_28] : memref<4x72xf32, #tpu.memory_space<vmem>>, vector<4x72xf32>
    tpu.vector_store %arg6[%c0_27, %c0_28], %18 {strides = array<i32>} : memref<4x72xf32, #tpu.memory_space<vmem>>, vector<4x72xf32>,
    %c0_29 = arith.constant 0 : index
    %c0_30 = arith.constant 0 : index
    %20 = vector.load %arg6[%c0_29, %c0_30] : memref<4x72xf32, #tpu.memory_space<vmem>>, vector<4x72xf32>
    %c0_31 = arith.constant 0 : index
    %c2 = arith.constant 2 : index
    %c0_32 = arith.constant 0 : index
    %c0_33 = arith.constant 0 : index
    %21 = vector.load %arg3[%c0_31, %c2, %c0_32, %c0_33] : memref<1x9x4x4xf32, #tpu.memory_space<vmem>>, vector<1x1x4x4xf32>
    %22 = vector.shape_cast %21 : vector<1x1x4x4xf32> to vector<4x4xf32>
    %c0_34 = arith.constant 0 : index
    %c0_35 = arith.constant 0 : index
    %c0_36 = arith.constant 0 : index
    %c1_37 = arith.constant 1 : index
    %23 = vector.load %arg2[%c0_34, %c0_35, %c0_36, %c1_37] : memref<1x1x4x90xf32, #tpu.memory_space<vmem>>, vector<1x1x4x72xf32>
    %24 = vector.shape_cast %23 : vector<1x1x4x72xf32> to vector<4x72xf32>
    %cst_38 = arith.constant dense<0.000000e+00> : vector<4x72xf32>
    %25 = tpu.matmul %22, %24, %cst_38 {dimension_numbers = #tpu.dot_dimension_numbers<[1], [0], [0], [1], [0, 0, 1, 1], [], []>} : vector<4x4xf32>, vector<4x72xf32>, vector<4x72xf32> -> vector<4x72xf32>
    %26 = arith.addf %20, %25 : vector<4x72xf32>
    %c0_39 = arith.constant 0 : index
    %c0_40 = arith.constant 0 : index
    %27 = vector.load %arg6[%c0_39, %c0_40] : memref<4x72xf32, #tpu.memory_space<vmem>>, vector<4x72xf32>
    tpu.vector_store %arg6[%c0_39, %c0_40], %26 {strides = array<i32>} : memref<4x72xf32, #tpu.memory_space<vmem>>, vector<4x72xf32>,
    %c0_41 = arith.constant 0 : index
    %c0_42 = arith.constant 0 : index
    %28 = vector.load %arg6[%c0_41, %c0_42] : memref<4x72xf32, #tpu.memory_space<vmem>>, vector<4x72xf32>
    %29 = vector.broadcast %1 : vector<4x1xf32> to vector<4x72xf32>
    %30 = arith.addf %28, %29 : vector<4x72xf32>
    %c0_43 = arith.constant 0 : index
    %c0_44 = arith.constant 0 : index
    %c1_45 = arith.constant 1 : index
    %c0_46 = arith.constant 0 : index
    %c0_47 = arith.constant 0 : index
    %31 = vector.load %arg5[%c0_43, %c0_44, %c1_45, %c0_46, %c0_47] : memref<1x1x4x4x72xf32, #tpu.memory_space<vmem>>, vector<1x1x1x4x72xf32>
    %32 = vector.shape_cast %31 : vector<1x1x1x4x72xf32> to vector<4x72xf32>
    %33 = vector.shape_cast %30 : vector<4x72xf32> to vector<1x1x1x4x72xf32>
    tpu.vector_store %arg5[%c0_43, %c0_44, %c1_45, %c0_46, %c0_47], %33 {strides = array<i32>} : memref<1x1x4x4x72xf32, #tpu.memory_space<vmem>>, vector<1x1x1x4x72xf32>,
    %c0_48 = arith.constant 0 : index
    %c3 = arith.constant 3 : index
    %c0_49 = arith.constant 0 : index
    %c0_50 = arith.constant 0 : index
    %34 = vector.load %arg3[%c0_48, %c3, %c0_49, %c0_50] : memref<1x9x4x4xf32, #tpu.memory_space<vmem>>, vector<1x1x4x4xf32>
    %35 = vector.shape_cast %34 : vector<1x1x4x4xf32> to vector<4x4xf32>
    %c0_51 = arith.constant 0 : index
    %c0_52 = arith.constant 0 : index
    %c0_53 = arith.constant 0 : index
    %c0_54 = arith.constant 0 : index
    %36 = vector.load %arg2[%c0_51, %c0_52, %c0_53, %c0_54] : memref<1x1x4x90xf32, #tpu.memory_space<vmem>>, vector<1x1x4x72xf32>
    %37 = vector.shape_cast %36 : vector<1x1x4x72xf32> to vector<4x72xf32>
    %cst_55 = arith.constant dense<0.000000e+00> : vector<4x72xf32>
    %38 = tpu.matmul %35, %37, %cst_55 {dimension_numbers = #tpu.dot_dimension_numbers<[1], [0], [0], [1], [0, 0, 1, 1], [], []>} : vector<4x4xf32>, vector<4x72xf32>, vector<4x72xf32> -> vector<4x72xf32>
    %c0_56 = arith.constant 0 : index
    %c0_57 = arith.constant 0 : index
    %39 = vector.load %arg6[%c0_56, %c0_57] : memref<4x72xf32, #tpu.memory_space<vmem>>, vector<4x72xf32>
    tpu.vector_store %arg6[%c0_56, %c0_57], %38 {strides = array<i32>} : memref<4x72xf32, #tpu.memory_space<vmem>>, vector<4x72xf32>,
    %c0_58 = arith.constant 0 : index
    %c0_59 = arith.constant 0 : index
    %40 = vector.load %arg6[%c0_58, %c0_59] : memref<4x72xf32, #tpu.memory_space<vmem>>, vector<4x72xf32>
    %c0_60 = arith.constant 0 : index
    %c4 = arith.constant 4 : index
    %c0_61 = arith.constant 0 : index
    %c0_62 = arith.constant 0 : index
    %41 = vector.load %arg3[%c0_60, %c4, %c0_61, %c0_62] : memref<1x9x4x4xf32, #tpu.memory_space<vmem>>, vector<1x1x4x4xf32>
    %42 = vector.shape_cast %41 : vector<1x1x4x4xf32> to vector<4x4xf32>
    %c0_63 = arith.constant 0 : index
    %c0_64 = arith.constant 0 : index
    %c0_65 = arith.constant 0 : index
    %c9 = arith.constant 9 : index
    %43 = vector.load %arg2[%c0_63, %c0_64, %c0_65, %c9] : memref<1x1x4x90xf32, #tpu.memory_space<vmem>>, vector<1x1x4x72xf32>
    %44 = vector.shape_cast %43 : vector<1x1x4x72xf32> to vector<4x72xf32>
    %cst_66 = arith.constant dense<0.000000e+00> : vector<4x72xf32>
    %45 = tpu.matmul %42, %44, %cst_66 {dimension_numbers = #tpu.dot_dimension_numbers<[1], [0], [0], [1], [0, 0, 1, 1], [], []>} : vector<4x4xf32>, vector<4x72xf32>, vector<4x72xf32> -> vector<4x72xf32>
    %46 = arith.addf %40, %45 : vector<4x72xf32>
    %c0_67 = arith.constant 0 : index
    %c0_68 = arith.constant 0 : index
    %47 = vector.load %arg6[%c0_67, %c0_68] : memref<4x72xf32, #tpu.memory_space<vmem>>, vector<4x72xf32>
    tpu.vector_store %arg6[%c0_67, %c0_68], %46 {strides = array<i32>} : memref<4x72xf32, #tpu.memory_space<vmem>>, vector<4x72xf32>,
    %c0_69 = arith.constant 0 : index
    %c0_70 = arith.constant 0 : index
    %48 = vector.load %arg6[%c0_69, %c0_70] : memref<4x72xf32, #tpu.memory_space<vmem>>, vector<4x72xf32>
    %49 = vector.broadcast %1 : vector<4x1xf32> to vector<4x72xf32>
    %50 = arith.addf %48, %49 : vector<4x72xf32>
    %c0_71 = arith.constant 0 : index
    %c0_72 = arith.constant 0 : index
    %c2_73 = arith.constant 2 : index
    %c0_74 = arith.constant 0 : index
    %c0_75 = arith.constant 0 : index
    %51 = vector.load %arg5[%c0_71, %c0_72, %c2_73, %c0_74, %c0_75] : memref<1x1x4x4x72xf32, #tpu.memory_space<vmem>>, vector<1x1x1x4x72xf32>
    %52 = vector.shape_cast %51 : vector<1x1x1x4x72xf32> to vector<4x72xf32>
    %53 = vector.shape_cast %50 : vector<4x72xf32> to vector<1x1x1x4x72xf32>
    tpu.vector_store %arg5[%c0_71, %c0_72, %c2_73, %c0_74, %c0_75], %53 {strides = array<i32>} : memref<1x1x4x4x72xf32, #tpu.memory_space<vmem>>, vector<1x1x1x4x72xf32>,
    %c0_76 = arith.constant 0 : index
    %c5 = arith.constant 5 : index
    %c0_77 = arith.constant 0 : index
    %c0_78 = arith.constant 0 : index
    %54 = vector.load %arg3[%c0_76, %c5, %c0_77, %c0_78] : memref<1x9x4x4xf32, #tpu.memory_space<vmem>>, vector<1x1x4x4xf32>
    %55 = vector.shape_cast %54 : vector<1x1x4x4xf32> to vector<4x4xf32>
    %c0_79 = arith.constant 0 : index
    %c0_80 = arith.constant 0 : index
    %c0_81 = arith.constant 0 : index
    %c0_82 = arith.constant 0 : index
    %56 = vector.load %arg2[%c0_79, %c0_80, %c0_81, %c0_82] : memref<1x1x4x90xf32, #tpu.memory_space<vmem>>, vector<1x1x4x72xf32>
    %57 = vector.shape_cast %56 : vector<1x1x4x72xf32> to vector<4x72xf32>
    %cst_83 = arith.constant dense<0.000000e+00> : vector<4x72xf32>
    %58 = tpu.matmul %55, %57, %cst_83 {dimension_numbers = #tpu.dot_dimension_numbers<[1], [0], [0], [1], [0, 0, 1, 1], [], []>} : vector<4x4xf32>, vector<4x72xf32>, vector<4x72xf32> -> vector<4x72xf32>
    %c0_84 = arith.constant 0 : index
    %c0_85 = arith.constant 0 : index
    %59 = vector.load %arg6[%c0_84, %c0_85] : memref<4x72xf32, #tpu.memory_space<vmem>>, vector<4x72xf32>
    tpu.vector_store %arg6[%c0_84, %c0_85], %58 {strides = array<i32>} : memref<4x72xf32, #tpu.memory_space<vmem>>, vector<4x72xf32>,
    %c0_86 = arith.constant 0 : index
    %c0_87 = arith.constant 0 : index
    %60 = vector.load %arg6[%c0_86, %c0_87] : memref<4x72xf32, #tpu.memory_space<vmem>>, vector<4x72xf32>
    %c0_88 = arith.constant 0 : index
    %c6 = arith.constant 6 : index
    %c0_89 = arith.constant 0 : index
    %c0_90 = arith.constant 0 : index
    %61 = vector.load %arg3[%c0_88, %c6, %c0_89, %c0_90] : memref<1x9x4x4xf32, #tpu.memory_space<vmem>>, vector<1x1x4x4xf32>
    %62 = vector.shape_cast %61 : vector<1x1x4x4xf32> to vector<4x4xf32>
    %c0_91 = arith.constant 0 : index
    %c0_92 = arith.constant 0 : index
    %c0_93 = arith.constant 0 : index
    %c1_94 = arith.constant 1 : index
    %63 = vector.load %arg2[%c0_91, %c0_92, %c0_93, %c1_94] : memref<1x1x4x90xf32, #tpu.memory_space<vmem>>, vector<1x1x4x72xf32>
    %64 = vector.shape_cast %63 : vector<1x1x4x72xf32> to vector<4x72xf32>
    %cst_95 = arith.constant dense<0.000000e+00> : vector<4x72xf32>
    %65 = tpu.matmul %62, %64, %cst_95 {dimension_numbers = #tpu.dot_dimension_numbers<[1], [0], [0], [1], [0, 0, 1, 1], [], []>} : vector<4x4xf32>, vector<4x72xf32>, vector<4x72xf32> -> vector<4x72xf32>
    %66 = arith.addf %60, %65 : vector<4x72xf32>
    %c0_96 = arith.constant 0 : index
    %c0_97 = arith.constant 0 : index
    %67 = vector.load %arg6[%c0_96, %c0_97] : memref<4x72xf32, #tpu.memory_space<vmem>>, vector<4x72xf32>
    tpu.vector_store %arg6[%c0_96, %c0_97], %66 {strides = array<i32>} : memref<4x72xf32, #tpu.memory_space<vmem>>, vector<4x72xf32>,
    %c0_98 = arith.constant 0 : index
    %c0_99 = arith.constant 0 : index
    %68 = vector.load %arg6[%c0_98, %c0_99] : memref<4x72xf32, #tpu.memory_space<vmem>>, vector<4x72xf32>
    %c0_100 = arith.constant 0 : index
    %c7 = arith.constant 7 : index
    %c0_101 = arith.constant 0 : index
    %c0_102 = arith.constant 0 : index
    %69 = vector.load %arg3[%c0_100, %c7, %c0_101, %c0_102] : memref<1x9x4x4xf32, #tpu.memory_space<vmem>>, vector<1x1x4x4xf32>
    %70 = vector.shape_cast %69 : vector<1x1x4x4xf32> to vector<4x4xf32>
    %c0_103 = arith.constant 0 : index
    %c0_104 = arith.constant 0 : index
    %c0_105 = arith.constant 0 : index
    %c9_106 = arith.constant 9 : index
    %71 = vector.load %arg2[%c0_103, %c0_104, %c0_105, %c9_106] : memref<1x1x4x90xf32, #tpu.memory_space<vmem>>, vector<1x1x4x72xf32>
    %72 = vector.shape_cast %71 : vector<1x1x4x72xf32> to vector<4x72xf32>
    %cst_107 = arith.constant dense<0.000000e+00> : vector<4x72xf32>
    %73 = tpu.matmul %70, %72, %cst_107 {dimension_numbers = #tpu.dot_dimension_numbers<[1], [0], [0], [1], [0, 0, 1, 1], [], []>} : vector<4x4xf32>, vector<4x72xf32>, vector<4x72xf32> -> vector<4x72xf32>
    %74 = arith.addf %68, %73 : vector<4x72xf32>
    %c0_108 = arith.constant 0 : index
    %c0_109 = arith.constant 0 : index
    %75 = vector.load %arg6[%c0_108, %c0_109] : memref<4x72xf32, #tpu.memory_space<vmem>>, vector<4x72xf32>
    tpu.vector_store %arg6[%c0_108, %c0_109], %74 {strides = array<i32>} : memref<4x72xf32, #tpu.memory_space<vmem>>, vector<4x72xf32>,
    %c0_110 = arith.constant 0 : index
    %c0_111 = arith.constant 0 : index
    %76 = vector.load %arg6[%c0_110, %c0_111] : memref<4x72xf32, #tpu.memory_space<vmem>>, vector<4x72xf32>
    %c0_112 = arith.constant 0 : index
    %c8 = arith.constant 8 : index
    %c0_113 = arith.constant 0 : index
    %c0_114 = arith.constant 0 : index
    %77 = vector.load %arg3[%c0_112, %c8, %c0_113, %c0_114] : memref<1x9x4x4xf32, #tpu.memory_space<vmem>>, vector<1x1x4x4xf32>
    %78 = vector.shape_cast %77 : vector<1x1x4x4xf32> to vector<4x4xf32>
    %c0_115 = arith.constant 0 : index
    %c0_116 = arith.constant 0 : index
    %c0_117 = arith.constant 0 : index
    %c10 = arith.constant 10 : index
    %79 = vector.load %arg2[%c0_115, %c0_116, %c0_117, %c10] : memref<1x1x4x90xf32, #tpu.memory_space<vmem>>, vector<1x1x4x72xf32>
    %80 = vector.shape_cast %79 : vector<1x1x4x72xf32> to vector<4x72xf32>
    %cst_118 = arith.constant dense<0.000000e+00> : vector<4x72xf32>
    %81 = tpu.matmul %78, %80, %cst_118 {dimension_numbers = #tpu.dot_dimension_numbers<[1], [0], [0], [1], [0, 0, 1, 1], [], []>} : vector<4x4xf32>, vector<4x72xf32>, vector<4x72xf32> -> vector<4x72xf32>
    %82 = arith.addf %76, %81 : vector<4x72xf32>
    %c0_119 = arith.constant 0 : index
    %c0_120 = arith.constant 0 : index
    %83 = vector.load %arg6[%c0_119, %c0_120] : memref<4x72xf32, #tpu.memory_space<vmem>>, vector<4x72xf32>
    tpu.vector_store %arg6[%c0_119, %c0_120], %82 {strides = array<i32>} : memref<4x72xf32, #tpu.memory_space<vmem>>, vector<4x72xf32>,
    %c0_121 = arith.constant 0 : index
    %c0_122 = arith.constant 0 : index
    %84 = vector.load %arg6[%c0_121, %c0_122] : memref<4x72xf32, #tpu.memory_space<vmem>>, vector<4x72xf32>
    %85 = vector.broadcast %1 : vector<4x1xf32> to vector<4x72xf32>
    %86 = arith.addf %84, %85 : vector<4x72xf32>
    %c0_123 = arith.constant 0 : index
    %c0_124 = arith.constant 0 : index
    %c3_125 = arith.constant 3 : index
    %c0_126 = arith.constant 0 : index
    %c0_127 = arith.constant 0 : index
    %87 = vector.load %arg5[%c0_123, %c0_124, %c3_125, %c0_126, %c0_127] : memref<1x1x4x4x72xf32, #tpu.memory_space<vmem>>, vector<1x1x1x4x72xf32>
    %88 = vector.shape_cast %87 : vector<1x1x1x4x72xf32> to vector<4x72xf32>
    %89 = vector.shape_cast %86 : vector<4x72xf32> to vector<1x1x1x4x72xf32>
    tpu.vector_store %arg5[%c0_123, %c0_124, %c3_125, %c0_126, %c0_127], %89 {strides = array<i32>} : memref<1x1x4x4x72xf32, #tpu.memory_space<vmem>>, vector<1x1x1x4x72xf32>,
    return
  }
  func.func @transform_0(%arg0: i32, %arg1: i32) -> (i32, i32, i32, i32) {
    %c0_i32 = arith.constant 0 : i32
    %c0_i32_0 = arith.constant 0 : i32
    %c0_i32_1 = arith.constant 0 : i32
    return %arg0, %arg1, %c0_i32, %c0_i32_0 : i32, i32, i32, i32
  }
  func.func @transform_1(%arg0: i32, %arg1: i32) -> (i32, i32, i32, i32) {
    %c0_i32 = arith.constant 0 : i32
    %c0_i32_0 = arith.constant 0 : i32
    %c0_i32_1 = arith.constant 0 : i32
    %c0_i32_2 = arith.constant 0 : i32
    return %arg0, %c0_i32, %c0_i32_0, %c0_i32_1 : i32, i32, i32, i32
  }
  func.func @transform_2(%arg0: i32, %arg1: i32) -> (i32, i32, i32) {
    %c0_i32 = arith.constant 0 : i32
    %c0_i32_0 = arith.constant 0 : i32
    %c0_i32_1 = arith.constant 0 : i32
    return %arg0, %c0_i32, %c0_i32_0 : i32, i32, i32
  }
  func.func @transform_3(%arg0: i32, %arg1: i32) -> (i32, i32, i32, i32, i32) {
    %c0_i32 = arith.constant 0 : i32
    %c0_i32_0 = arith.constant 0 : i32
    %c0_i32_1 = arith.constant 0 : i32
    %c0_i32_2 = arith.constant 0 : i32
    return %arg0, %arg1, %c0_i32, %c0_i32_0, %c0_i32_1 : i32, i32, i32, i32, i32
  }
}

</mosaic_0001>

<bundles_post_ra>
// kernel: group_conv_transpose.1
= control target key start
LH: loop header
LB: loop body
LE: loop exit
PB: predicated region body
PF: predicated region fallthrough
CT: control target
= control target key end

     0   :  { %s1341_s12 = smov 0   ;;  %s1343_s13 = smov 0   ;;  %s1494_s0 = inlined_call_operand.vmem [shape: f32[3,2,4,90], index: 0, kind: input, shape index: {}]   ;;  %s1495_s1 = inlined_call_operand.vmem [shape: f32[3,9,4,4], index: 1, kind: input, shape index: {}]   ;;  %s1496_s2 = inlined_call_operand.vmem [shape: f32[3,4,1], index: 2, kind: input, shape index: {}]   ;;  %s1497_s3 = inlined_call_operand.vmem [shape: f32[3,2,4,4,72], index: 3, kind: output, shape index: {}]  }
   0x1   :  { %s1345_s14 = smov 0   ;;  %s1347_s15 = smov 0  }
   0x2   :  { %s1349_s16 = smov 0  }
   0x3 LB: > { %s22_s17 = sadd.s32 1, %s1305_s14  ;;  %s25_s18 = sadd.s32 1, %s1309_s15  ;;  %s1313_s16 = sphi %s1349_s16, %s13_s16   ;;  %s1309_s15 = sphi %s1347_s15, %s1501_s15   ;;  %s1305_s14 = sphi %s1345_s14, %s1500_s14   ;;  %s1301_s13 = sphi %s1343_s13, %s1499_s13   ;;  %s1297_s12 = sphi %s1341_s12, %s1498_s12  }
   0x4   : > { %p23_p0 = scmp.ge.s32.totalorder %s22_s17, 2  ;;  %p1124_p1 = scmp.ge.s32.totalorder %s1313_s16, 1 }
   0x5   : > { %p175_p2 = scmp.lt.s32.totalorder %s1313_s16, 7 }
   0x6   : > { %s1503_s17 = smov (%p23_p0, %s22_s17), 0  ;;  %s1505_s18 = smov (!%p23_p0, %s25_s18), %s1309_s15 }
   0x7   : > { %p176_p3 = pnand %p1124_p1, %p175_p2  ;;  %p27_p4 = scmp.ge.s32.totalorder %s1505_s18, 3 }
   0x8   : > { %p215_p5 = scmp.lt.s32.totalorder (!%p176_p3), %s1301_s13, 2  ;;  %p217_p6 = scmp.lt.s32.totalorder (!%p176_p3), %s1297_s12, 1 }
   0x9   : > { %s1507_s18 = smov (%p27_p4, %s1505_s18), 0  ;;  %179 = sbr.rel (%p176_p3) target bundleno = 398 (0x18e), region = 32 }
   0xa   : > { %s1317_s29 = smov (!%p176_p3), 127   ;;  %s1319_s4 = smov (!%p176_p3), 119  }
   0xb   : > { %s1320_s8 = smov (!%p176_p3), 118  }
   0xe   : > { %v1315_v0 = vmov 0.0   ;;  %vm1316_vm0 = vmmov 0   ;;  %s1509_s13 = smov (!%p215_p5, %s1301_s13), 2  ;;  %s1511_s12 = smov (!%p217_p6, %s1297_s12), 1  ;;  %vm248_vm1 = vcmask 1043456   ;;  %vm244_vm2 = vcmask 31744  }
   0xf   : > { %1181 = vmatprep.subr.mxu0 %v1315_v0  ;;  %1183 = vmatprep.mubr.msk.f32.mxu0 %vm1316_vm0, %v1315_v0  ;;  %s1125_s19 = sshll.u32 %s1509_s13, 1  ;;  %s1226_s21 = smul.u32 36, %s1509_s13  ;;  %v1318_v8 = vmov 0   ;;  %vm322_vm3 = vcmask 584704  }
  0x10   : > { %1186 = vmatprep.subr.mxu1 %v1315_v0  ;;  %1188 = vmatprep.mubr.msk.f32.mxu1 %vm1316_vm0, %v1315_v0  ;;  %s220_s20 = sadd.s32 %s1125_s19, %s1511_s12  ;;  %s1128_s30 = sshll.u32 %s1509_s13, 2 }
  0x11   : > { %s1126_s22 = sshll.u32 %s220_s20, 2  ;;  %s1392_s28 = scalar_lea.vmem %s1495_s1, %s1226_s21  ;;  %1273 = vset.pattern.permute.xlu1 %v1318_v8  ;;  %1274 = vset.pattern.permute.xlu0 %v1318_v8 }
  0x12   : > { %s1387_s25 = scalar_lea.vmem %s1494_s0, %s1126_s22  ;;  %v242_v6 = vld [vmem:[%s1392_s28] sm:$0xf]  ;;  %v1134_v9 = vld [vmem:[%s1392_s28 + $0x4] sm:$0xf]  ;;  %s231_s7 = scalar_lea.vmem %s1496_s2, %s1128_s30  ;;  %v1141_v12 = vld [vmem:[%s1392_s28 + $0xc] sm:$0xf] }
  0x13   : > { %v415_v1 = vld [vmem:[%s1387_s25] sm:$0xf]  ;;  %v1148_v15 = vld [vmem:[%s1392_s28 + $0x14] sm:$0xf]  ;;  %v1137_v16 = vld [vmem:[%s1392_s28 + $0x8] sm:$0xf] }
  0x14   : > { %v751_v2 = vld [vmem:[%s1387_s25] sm:$0xf]  ;;  %417 = vrot.lane.b32.xlu0 %v415_v1, %s1317_s29  ;;  %v1144_v19 = vld [vmem:[%s1392_s28 + $0x10] sm:$0xf]  ;;  %v1154_v22 = vld [vmem:[%s1392_s28 + $0x1c] sm:$0xf] }
  0x15   : > { %v583_v3 = vld [vmem:[%s1387_s25] sm:$0xf]  ;;  %753 = vrot.lane.b32.xlu1 %v751_v2, %s1317_s29  ;;  %v1151_v23 = vld [vmem:[%s1392_s28 + $0x18] sm:$0xf]  ;;  %s1129_s9 = sshll.u32 %s1511_s12, 2  ;;  %s1130_s10 = sshll.u32 %s1509_s13, 3 }
  0x16   : > { %v835_v4 = vld [vmem:[%s1387_s25] sm:$0xf]  ;;  %s238_s11 = sadd.s32 %s1130_s10, %s1129_s9 }
  0x17   : > { %v243_v5 = vld [vmem:[%s1387_s25] sm:$0xf]  ;;  %s1131_s19 = sshll.u32 %s238_s11, 2 }
  0x18   : > { %v334_v7 = vld [vmem:[%s1387_s25] sm:$0xf]  ;;  %1182 = vmatpush3.msk.msra.mxu0 %vm248_vm1, %v243_v5  ;;  %585 = vrot.lane.b32.xlu0 %v583_v3, %s1319_s4  ;;  %s1461_s22 = scalar_lea.vmem %s1497_s3, %s1131_s19 }
  0x19   : > { %1187 = vmatpush3.msk.msra.mxu1 %vm248_vm1, %v334_v7  ;;  %1184 = vmatmul.mubr.msk.f32.vlgmr.msra.gmra.mxu0 %vm244_vm2, %v242_v6  ;;  %v502_v10 = vld [vmem:[%s1387_s25] sm:$0xf] }
  0x1a   : > { %1189 = vmatmul.mubr.msk.f32.vlgmr.msra.gmra.mxu1 %vm244_vm2, %v1134_v9  ;;  %837 = vrot.lane.b32.xlu1 %v835_v4, %s1319_s4  ;;  %v919_v11 = vld [vmem:[%s1387_s25] sm:$0xf] }
  0x1b   : > { %1191 = vmatprep.subr.mxu0 %v1315_v0  ;;  %1193 = vmatprep.mubr.msk.f32.mxu0 %vm1316_vm0, %v1315_v0  ;;  %v670_v13 = vld [vmem:[%s1387_s25] sm:$0xf] }
  0x1c   : > { %1196 = vmatprep.subr.mxu1 %v1315_v0  ;;  %1198 = vmatprep.mubr.msk.f32.mxu1 %vm1316_vm0, %v1315_v0  ;;  %v241_v14 = vld [vmem:[%s231_s7] sm:$0xf] }
  0x1d   : > { %1197 = vmatpush3.msk.msra.mxu1 %vm248_vm1, %v502_v10  ;;  %921 = vrot.lane.b32.xlu0 %v919_v11, %s1320_s8  ;;  %v1157_v25 = vld [vmem:[%s1392_s28 + $0x20] sm:$0xf] }
  0x1e   : > { %1199 = vmatmul.mubr.msk.f32.vlgmr.msra.gmra.mxu1 %vm244_vm2, %v1141_v12  ;;  %1206 = vmatprep.subr.mxu1 %v1315_v0 }
  0x1f   : > { %1208 = vmatprep.mubr.msk.f32.mxu1 %vm1316_vm0, %v1315_v0  ;;  %1207 = vmatpush3.msk.msra.mxu1 %vm248_vm1, %v670_v13 }
  0x20   : > { %327 = vperm.xlu1 %1273, %v241_v14   ;;  %1216 = vmatprep.subr.mxu1 %v1315_v0 }
  0x22   : > { %1209 = vmatmul.mubr.msk.f32.vlgmr.msra.gmra.mxu1 %vm244_vm2, %v1148_v15 }
  0x23   : > { %1218 = vmatprep.mubr.msk.f32.mxu1 %vm1316_vm0, %v1315_v0 }
  0x86   : > { %v418_v17 = vpop.permute.xlu0 %417 }
  0x87   : > { %v754_v18 = vpop.permute.xlu1 %753  ;;  %1192 = vmatpush3.msk.msra.mxu0 %vm248_vm1, %v418_v17 }
  0x88   : > { %1194 = vmatmul.mubr.msk.f32.vlgmr.msra.gmra.mxu0 %vm244_vm2, %v1137_v16  ;;  %1201 = vmatprep.subr.mxu0 %v1315_v0 }
  0x89   : > { %1203 = vmatprep.mubr.msk.f32.mxu0 %vm1316_vm0, %v1315_v0 }
  0x8a   : > { %v586_v20 = vpop.permute.xlu0 %585 }
  0x8b   : > { %1202 = vmatpush3.msk.msra.mxu0 %vm248_vm1, %v586_v20 }
  0x8c   : > { %v838_v21 = vpop.permute.xlu1 %837  ;;  %1204 = vmatmul.mubr.msk.f32.vlgmr.msra.gmra.mxu0 %vm244_vm2, %v1144_v19  ;;  %1211 = vmatprep.subr.mxu0 %v1315_v0 }
  0x8d   : > { %1217 = vmatpush3.msk.msra.mxu1 %vm248_vm1, %v838_v21  ;;  %1212 = vmatpush3.msk.msra.mxu0 %vm248_vm1, %v754_v18 }
  0x8e   : > { %1213 = vmatprep.mubr.msk.f32.mxu0 %vm1316_vm0, %v1315_v0  ;;  %1219 = vmatmul.mubr.msk.f32.vlgmr.msra.gmra.mxu1 %vm244_vm2, %v1154_v22 }
  0x8f   : > { %v922_v24 = vpop.permute.xlu0 %921  ;;  %1221 = vmatprep.subr.mxu0 %v1315_v0 }
  0x90   : > { %1214 = vmatmul.mubr.msk.f32.vlgmr.msra.gmra.mxu0 %vm244_vm2, %v1151_v23 }
  0x91   : > { %1222 = vmatpush3.msk.msra.mxu0 %vm248_vm1, %v922_v24  ;;  %1223 = vmatprep.mubr.msk.f32.mxu0 %vm1316_vm0, %v1315_v0 }
  0x94   : > { %1224 = vmatmul.mubr.msk.f32.vlgmr.msra.gmra.mxu0 %vm244_vm2, %v1157_v25 }
  0x9b   : > { %v328_v31 = vpop.permute.xlu1 %327 }
  0xd9   : > { %v318_v26 = vpop.f32.mrf.mxu0 }
  0xda   : > { %v407_v27 = vpop.f32.mrf.mxu1  ;;  %323 = vst.msk [vmem:[#allocation2] sm:$0xf] %vm322_vm3, %v318_v26 }
  0xdb   : > { %v1185_v28 = vpop.f32.mrf.mxu0 }
  0xdc   : > { %v1190_v29 = vpop.f32.mrf.mxu1 }
  0xde   : > { %v575_v30 = vpop.f32.mrf.mxu1 }
  0xe0   : > { %v1200_v32 = vpop.f32.mrf.mxu1 }
  0xe1   : > { %v324_v33 = vld [vmem:[#allocation2] sm:$0xf] }
  0xe2   : > { %411 = vst.msk [vmem:[#allocation2] sm:$0xf] %vm322_vm3, %v407_v27  ;;  %v330_v34 = vadd.f32 %v328_v31, %v324_v33  ;;  %v743_v35 = vpop.f32.mrf.mxu1 }
  0xe4   : > { %331 = vst.msk [vmem:[%s1461_s22] sm:$0xf] %vm322_vm3, %v330_v34  ;;  %v1210_v36 = vpop.f32.mrf.mxu1 }
  0xe9   : > { %v412_v37 = vld [vmem:[#allocation2] sm:$0xf] }
 0x148   : > { %v490_v38 = vpop.f32.mrf.mxu0 }
 0x149   : > { %v494_v39 = vadd.f32 %v490_v38, %v412_v37 }
 0x14a   : > { %v1195_v40 = vpop.f32.mrf.mxu0 }
 0x14b   : > { %495 = vst.msk [vmem:[#allocation2] sm:$0xf] %vm322_vm3, %v494_v39 }
 0x14c   : > { %v658_v41 = vpop.f32.mrf.mxu0 }
 0x14e   : > { %v1205_v42 = vpop.f32.mrf.mxu0  ;;  %v910_v43 = vpop.f32.mrf.mxu1 }
 0x150   : > { %v826_v44 = vpop.f32.mrf.mxu0  ;;  %v1220_v45 = vpop.f32.mrf.mxu1 }
 0x152   : > { %v496_v46 = vld [vmem:[#allocation2] sm:$0xf]  ;;  %v1215_v47 = vpop.f32.mrf.mxu0 }
 0x153   : > { %v497_v48 = vadd.f32 %v496_v46, %v328_v31  ;;  %579 = vst.msk [vmem:[#allocation2] sm:$0xf] %vm322_vm3, %v575_v30 }
 0x154   : > { %v994_v49 = vpop.f32.mrf.mxu0 }
 0x155   : > { %1140 = vst.msk [vmem:[%s1461_s22 + $0x4] sm:$0xf] %vm322_vm3, %v497_v48 }
 0x156   : > { %v1225_v50 = vpop.f32.mrf.mxu0 }
 0x15a   : > { %v580_v51 = vld [vmem:[#allocation2] sm:$0xf] }
 0x15b   : > { %v662_v52 = vadd.f32 %v658_v41, %v580_v51 }
 0x15d   : > { %663 = vst.msk [vmem:[#allocation2] sm:$0xf] %vm322_vm3, %v662_v52 }
 0x164   : > { %v664_v53 = vld [vmem:[#allocation2] sm:$0xf] }
 0x165   : > { %v665_v54 = vadd.f32 %v664_v53, %v328_v31  ;;  %747 = vst.msk [vmem:[#allocation2] sm:$0xf] %vm322_vm3, %v743_v35 }
 0x167   : > { %1147 = vst.msk [vmem:[%s1461_s22 + $0x8] sm:$0xf] %vm322_vm3, %v665_v54 }
 0x16c   : > { %v748_v55 = vld [vmem:[#allocation2] sm:$0xf] }
 0x16d   : > { %v830_v56 = vadd.f32 %v826_v44, %v748_v55 }
 0x16f   : > { %831 = vst.msk [vmem:[#allocation2] sm:$0xf] %vm322_vm3, %v830_v56 }
 0x176   : > { %v832_v57 = vld [vmem:[#allocation2] sm:$0xf] }
 0x177   : > { %v914_v58 = vadd.f32 %v910_v43, %v832_v57 }
 0x179   : > { %915 = vst.msk [vmem:[#allocation2] sm:$0xf] %vm322_vm3, %v914_v58 }
 0x180   : > { %v916_v59 = vld [vmem:[#allocation2] sm:$0xf] }
 0x181   : > { %v998_v60 = vadd.f32 %v994_v49, %v916_v59 }
 0x183   : > { %999 = vst.msk [vmem:[#allocation2] sm:$0xf] %vm322_vm3, %v998_v60 }
 0x18a   : > { %v1000_v61 = vld [vmem:[#allocation2] sm:$0xf] }
 0x18b   : > { %v1001_v62 = vadd.f32 %v1000_v61, %v328_v31 }
 0x18d   : > { %1160 = vst.msk [vmem:[%s1461_s22 + $0xc] sm:$0xf] %vm322_vm3, %v1001_v62 }
 0x18e PF: > { %s13_s16 = sadd.s32 1, %s1313_s16   ;;  %s1498_s12 = smov %s1305_s14 }
 0x18f   : > { %p10_p7 = scmp.ge.s32.totalorder %s13_s16, 8   ;;  %s1499_s13 = smov %s1309_s15 }
 0x190   : > { %s1500_s14 = smov %s1503_s17  ;;  %s1501_s15 = smov %s1507_s18 }
 0x191   :  { %12 = sbr.rel (!%p10_p7) target bundleno = 3 (0x3), region = 79 }

</bundles_post_ra>
